<compile_context>
chip_gen: v7x
topology: tpu7x:2x2x1
jax: 0.10.0
libtpu: 0.0.40
codegen_flags: <defaults>
</compile_context>

<pallas_src>
import jax
import jax.numpy as jnp
from jax import lax
from jax.experimental import pallas as pl
from jax.experimental.pallas import tpu as pltpu


# Route to the MXU only when the matmul is big enough to fill it.
_MXU_MIN_N = 64
_MXU_MIN_M = 128


def _linear_add_kernel(x_ref, w_ref, addend_ref, o_ref):
    """o = broadcast(x @ w.T) + addend   (Linear bias pre-folded into `addend`)."""
    x = x_ref[...].astype(jnp.float32)        # (M, K)
    w = w_ref[...].astype(jnp.float32)        # (N, K) PyTorch Linear layout, untransposed
    M = x.shape[0]
    N = w.shape[0]

    if M == 1:
        # M=1 matvec: VPU elementwise mul + XLU lane reduce; MXU stays idle.
        # (1, K) * (N, K) -> (N, K) -> sum lanes -> (N,) -> keep rank-2 (1, N).
        v1 = jnp.sum(x * w, axis=-1)[None, :]                        # (1, N)
    elif N < _MXU_MIN_N or M < _MXU_MIN_M:
        # Small-N batched path: unroll over output features on the VPU/XLU;
        # N=3 would fill only 3/256 MXU output columns and pay push/pop latency.
        cols = [jnp.sum(x * w[n:n + 1, :], axis=-1, keepdims=True)   # (M, 1)
                for n in range(N)]
        v1 = jnp.concatenate(cols, axis=-1)                          # (M, N)
    else:
        # Real-size path: MXU matmul contracting K on both operands (== x @ w.T).
        # TODO(synk): if this path is ever hot, store w pre-transposed as (K, N)
        # to avoid a relayout ahead of the MXU push.
        v1 = lax.dot_general(x, w, (((1,), (1,)), ((), ())),
                             preferred_element_type=jnp.float32)     # (M, N)

    o_ref[...] = (v1 + addend_ref[...].astype(jnp.float32)).astype(o_ref.dtype)


def prepare_addend(b, other):
    """One-time (param-setup) fold of the Linear bias into the additive operand.

    v1 + other == (x @ w.T + b) + other == (x @ w.T) + (b + other), so the bias
    never has to be DMA'd or added inside the hot-path kernel.
    """
    return other + b  # broadcast (N,) bias against `other`


def linear_add(x, w, addend):
    """x: (M, K); w: (N, K) (PyTorch Linear layout); addend broadcastable vs (M, N)."""
    M, K = x.shape
    N, K_w = w.shape
    assert K == K_w, f"weight inner dim {K_w} != input features {K}"
    out_shape = jnp.broadcast_shapes((M, N), addend.shape)

    # If `addend` already has the final shape/dtype (and is dead after the call),
    # alias it to the output so the custom call reuses its buffer.
    aliases = {2: 0} if (addend.shape == out_shape and addend.dtype == x.dtype) else {}

    return pl.pallas_call(
        _linear_add_kernel,
        out_shape=jax.ShapeDtypeStruct(out_shape, x.dtype),
        in_specs=[
            pl.BlockSpec(memory_space=pltpu.MemorySpace.VMEM),  # x      (M, K)
            pl.BlockSpec(memory_space=pltpu.MemorySpace.VMEM),  # w      (N, K)
            pl.BlockSpec(memory_space=pltpu.MemorySpace.VMEM),  # addend (= b + other)
        ],
        out_specs=pl.BlockSpec(memory_space=pltpu.MemorySpace.VMEM),
        input_output_aliases=aliases,
    )(x, w, addend)


if __name__ == "__main__":
    key = jax.random.PRNGKey(0)
    k_x, k_w, k_b, k_o = jax.random.split(key, 4)

    in_features, out_features = 20, 3

    # Deterministic "Linear" params (PyTorch-style uniform +/- 1/sqrt(fan_in)).
    bound = 1.0 / (in_features ** 0.5)
    w = jax.random.uniform(k_w, (out_features, in_features),
                           jnp.float32, -bound, bound)
    b = jax.random.uniform(k_b, (out_features,), jnp.float32, -bound, bound)

    # Inputs (the (3, 20) PyTorch default `other` is not broadcastable; use (3, 3)).
    x1 = jax.random.uniform(k_x, (1, in_features), jnp.float32)      # like torch.rand(1, 20)
    other = jax.random.uniform(k_o, (out_features, out_features), jnp.float32)

    # One-time setup fold: removes the bias operand from the hot path.
    addend = prepare_addend(b, other)

    # Donate `addend` so the pallas-level aliasing is a true in-place reuse.
    out = jax.jit(linear_add, donate_argnums=(2,))(x1, w, addend)
    jax.block_until_ready(out)

    # Cross-check against a plain-JAX reference of the original forward pass.
    ref = (x1 @ w.T + b) + other
    assert out.shape == (out_features, out_features)
    assert jnp.allclose(out, ref, atol=1e-5, rtol=1e-5)

    print("KERNEL_OK")
</pallas_src>

<mosaic_0001>
module attributes {stable_mosaic.version = 11 : i64} {
  func.func @_linear_add_kernel(%arg0: memref<1x20xf32, #tpu.memory_space<vmem>>, %arg1: memref<3x20xf32, #tpu.memory_space<vmem>>, %arg2: memref<3x3xf32, #tpu.memory_space<vmem>>, %arg3: memref<3x3xf32, #tpu.memory_space<vmem>>) attributes {dimension_semantics = [], scalar_prefetch = 0 : i64, scratch_operands = 0 : i64, tpu.core_type = #tpu.core_type<tc>} {
    %c0 = arith.constant 0 : index
    %c0_0 = arith.constant 0 : index
    %0 = vector.load %arg0[%c0, %c0_0] : memref<1x20xf32, #tpu.memory_space<vmem>>, vector<1x20xf32>
    %c0_1 = arith.constant 0 : index
    %c0_2 = arith.constant 0 : index
    %1 = vector.load %arg1[%c0_1, %c0_2] : memref<3x20xf32, #tpu.memory_space<vmem>>, vector<3x20xf32>
    %2 = vector.broadcast %0 : vector<1x20xf32> to vector<3x20xf32>
    %3 = arith.mulf %2, %1 : vector<3x20xf32>
    %cst = arith.constant dense<0.000000e+00> : vector<3xf32>
    %4 = vector.multi_reduction <add>, %3, %cst [1] : vector<3x20xf32> to vector<3xf32>
    %5 = vector.shape_cast %4 : vector<3xf32> to vector<1x3xf32>
    %c0_3 = arith.constant 0 : index
    %c0_4 = arith.constant 0 : index
    %6 = vector.load %arg2[%c0_3, %c0_4] : memref<3x3xf32, #tpu.memory_space<vmem>>, vector<3x3xf32>
    %7 = vector.broadcast %5 : vector<1x3xf32> to vector<3x3xf32>
    %8 = arith.addf %7, %6 : vector<3x3xf32>
    %c0_5 = arith.constant 0 : index
    %c0_6 = arith.constant 0 : index
    %9 = vector.load %arg3[%c0_5, %c0_6] : memref<3x3xf32, #tpu.memory_space<vmem>>, vector<3x3xf32>
    tpu.vector_store %arg3[%c0_5, %c0_6], %8 {strides = array<i32>} : memref<3x3xf32, #tpu.memory_space<vmem>>, vector<3x3xf32>,
    return
  }
}

</mosaic_0001>

<bundles_post_ra>
// kernel: linear_add.1
= control target key start
LH: loop header
LB: loop body
LE: loop exit
PB: predicated region body
PF: predicated region fallthrough
CT: control target
= control target key end

     0   :  { %8 = vsyncpa [#allocation3], 0  ;;  %s316_s0 = inlined_call_operand.hbm [shape: f32[1,20], index: 0, kind: input, shape index: {}]   ;;  %s317_s1 = inlined_call_operand.hbm [shape: f32[3,20], index: 1, kind: input, shape index: {}]   ;;  %s318_s2 = inlined_call_operand.hbm [shape: f32[3,3], index: 2, kind: input, shape index: {}, may-alias: {2,3}]   ;;  %s319_s3 = inlined_call_operand.hbm [shape: f32[3,3], index: 3, kind: output, shape index: {}, may-alias: {2,3}]  }
   0x1   :  { %9 = vsyncpa [#allocation6], 0 }
   0x2   :  { %10 = vsyncpa [#allocation4], 0  ;;  %s243_s12 = smov [#allocation5]   ;;  %s244_s14 = smov [#allocation2]  }
   0x3   :  { %s27_s13 = sshll.u32 %s243_s12, 4  ;;  %s17_s15 = sshll.u32 %s244_s14, 4  ;;  %s28_s13 = int_to_ptr.vmem [resolvable:$true] %s27_s13  ;;  %s18_s15 = int_to_ptr.vmem [resolvable:$true] %s17_s15 }
   0x4   :  { %s149_s18 = scalar_lea.hbm %s317_s1, 64 }
   0x5   :  { %p150_p0 = scmp.ne.s32.totalorder %s317_s1, %s149_s18  ;;  %p153_p1 = scmp.lt.u32.totalorder %s149_s18, %s317_s1 }
   0x7   :  { %p155_p2 = pnand %p153_p1, %p150_p0 }
   0x9   :  { %158 = shalt.err (!%p155_p2)
}
   0xa   :  { %s159_s23 = scalar_lea.vmem %s28_s13, 64  ;;  %p164_p4 = scmp.lt.s32.totalorder %s28_s13, %s28_s13 }
   0xb   :  { %p160_p3 = scmp.ne.s32.totalorder %s28_s13, %s159_s23  ;;  %p165_p5 = scmp.lt.s32.totalorder %s159_s23, %s159_s23 }
   0xd   :  { %p166_p6 = por %p165_p5, %p164_p4 }
   0xf   :  { %p167_p7 = pnand %p166_p6, %p160_p3 }
  0x11   :  { %170 = shalt.err (!%p167_p7)
}
  0x12   :  { %30 = dma.hbm_to_vmem [thread:$0]  %s317_s1, 64, %s28_s13, [#allocation6]  }
  0x13   :  { %s171_s28 = scalar_lea.hbm %s316_s0, 16 }
  0x14   :  { %p172_p8 = scmp.ne.s32.totalorder %s316_s0, %s171_s28  ;;  %p175_p9 = scmp.lt.u32.totalorder %s171_s28, %s316_s0 }
  0x16   :  { %p177_p10 = pnand %p175_p9, %p172_p8 }
  0x18   :  { %180 = shalt.err (!%p177_p10)
}
  0x19   :  { %s181_s6 = scalar_lea.vmem %s18_s15, 16  ;;  %s185_s7 = scalar_lea.vmem %s18_s15, 32 }
  0x1a   :  { %p182_p11 = scmp.ne.s32.totalorder %s18_s15, %s181_s6  ;;  %p186_p12 = scmp.lt.s32.totalorder %s18_s15, %s18_s15 }
  0x1b   :  { %p187_p13 = scmp.lt.s32.totalorder %s185_s7, %s181_s6 }
  0x1d   :  { %p188_p0 = por %p187_p13, %p186_p12 }
  0x1f   :  { %p189_p1 = pnand %p188_p0, %p182_p11 }
  0x21   :  { %192 = shalt.err (!%p189_p1)
}
  0x22   :  { %20 = dma.hbm_to_vmem [thread:$0]  %s316_s0, 16, %s18_s15, [#allocation3]  }
  0x23   :  { %s245_s9 = smov [#allocation7]   ;;  %s193_s13 = scalar_lea.hbm %s318_s2, 64 }
  0x24   :  { %s37_s10 = sshll.u32 %s245_s9, 4  ;;  %p194_p2 = scmp.ne.s32.totalorder %s318_s2, %s193_s13  ;;  %s38_s10 = int_to_ptr.vmem [resolvable:$true] %s37_s10 }
  0x25   :  { %p197_p3 = scmp.lt.u32.totalorder %s193_s13, %s318_s2 }
  0x27   :  { %p199_p4 = pnand %p197_p3, %p194_p2 }
  0x29   :  { %202 = shalt.err (!%p199_p4)
}
  0x2a   :  { %s203_s19 = scalar_lea.vmem %s38_s10, 64  ;;  %p208_p6 = scmp.lt.s32.totalorder %s38_s10, %s38_s10 }
  0x2b   :  { %p204_p5 = scmp.ne.s32.totalorder %s38_s10, %s203_s19  ;;  %p209_p7 = scmp.lt.s32.totalorder %s203_s19, %s203_s19 }
  0x2d   :  { %p210_p8 = por %p209_p7, %p208_p6 }
  0x2f   :  { %p211_p9 = pnand %p210_p8, %p204_p5 }
  0x31   :  { %214 = shalt.err (!%p211_p9)
}
  0x32   :  { %40 = dma.hbm_to_vmem [thread:$0]  %s318_s2, 64, %s38_s10, [#allocation6]  }
  0x33   :  { %237 = dma.done.wait [#allocation3], 16  }
  0x34   :  { %238 = vsyncadd [#allocation3], 4294967280 }
  0x35   :  { %239 = dma.done.wait [#allocation6], 128  }
  0x36   :  { %240 = vsyncadd [#allocation6], 4294967168  ;;  %v65_v0 = vlaneseq  ;;  %vm59_vm0 = vcmask 157696   ;;  %v141_v4 = vld [vmem:[#allocation2] ss:$0 sm:$0xff]  ;;  %v246_v13 = vmov 0  }
  0x37   :  { %v51_v5 = vld [vmem:[#allocation5] sm:$0x7]  ;;  %v63_v6 = vld [vmem:[#allocation7] sm:$0x7]  ;;  %147 = vset.pattern.permute.xlu1 %v246_v13  ;;  %148 = vset.pattern.permute.xlu0 %v246_v13  ;;  %vm118_vm1 = vcmask 1041409   ;;  %s247_s2 = smov [#allocation8]  }
  0x38   :  { %v66_v1 = vshrl.u32 %v65_v0, 7  ;;  %v58_v7 = vmul.f32 %v141_v4, %v51_v5  ;;  %v105_v14 = vand.u32 127, %v65_v0  ;;  %s131_s20 = sshll.u32 %s247_s2, 4  ;;  %vm120_vm2 = vcmask 1042434   ;;  %s132_s20 = int_to_ptr.vmem [resolvable:$true] %s131_s20 }
  0x39   :  { %vm123_vm3 = vcmask 18432   ;;  %s215_s21 = scalar_lea.vmem %s132_s20, 64  ;;  %p220_p11 = scmp.lt.s32.totalorder %s132_s20, %s132_s20 }
  0x3a   :  { %v74_v2 = vsub.s32 1, %v66_v1  ;;  %v81_v3 = vsub.s32 2, %v66_v1  ;;  %v60_v9 = vsel %vm59_vm0, %v58_v7, 0.0  ;;  %v67_v11 = vsub.s32 0, %v66_v1  ;;  %p216_p10 = scmp.ne.s32.totalorder %s132_s20, %s215_s21  ;;  %p221_p12 = scmp.lt.s32.totalorder %s215_s21, %s215_s21 }
  0x3b   :  { %61 = vadd.xlane.f32.xlu0 %v60_v9  ;;  %v108_v15 = vsub.s32 %v105_v14, %v66_v1 }
  0x3c   :  { %v75_v8 = vrot.slane %v63_v6, %v74_v2  ;;  %v82_v10 = vrot.slane %v63_v6, %v81_v3  ;;  %v68_v12 = vrot.slane %v63_v6, %v67_v11  ;;  %p222_p13 = por %p221_p12, %p220_p11 }
  0x3e   :  { %77 = vbcast.lane.b32.xlu1 %v75_v8, 256  ;;  %p223_p0 = pnand %p222_p13, %p216_p10 }
  0x42   :  { %84 = vbcast.lane.b32.xlu1 %v82_v10, 256 }
  0x51   :  { %70 = vbcast.lane.b32.xlu0 %v68_v12, 256 }
  0xb0   :  { %v78_v17 = vpop.permute.xlu1 %77 }
  0xb4   :  { %v85_v21 = vpop.permute.xlu1 %84 }
  0xc8   :  { %v62_v16 = vpop.xlane.xlu0 %61 }
  0xc9   :  { %v90_v20 = vadd.f32 %v78_v17, %v62_v16  ;;  %v91_v22 = vadd.f32 %v85_v21, %v62_v16 }
  0xcc   :  { %v71_v18 = vpop.permute.xlu0 %70 }
  0xcd   :  { %v89_v19 = vadd.f32 %v71_v18, %v62_v16 }
  0xcf   :  { %96 = vperm.xlu1 %147, %v89_v19  }
  0xd3   :  { %99 = vperm.xlu1 %147, %v90_v20  }
  0xd7   :  { %102 = vperm.xlu1 %147, %v91_v22  }
 0x14e   :  { %v97_v23 = vpop.permute.xlu1 %96 }
 0x14f   :  { %v109_v26 = vrot.slane %v97_v23, %v108_v15 }
 0x152   :  { %v100_v24 = vpop.permute.xlu1 %99 }
 0x153   :  { %v113_v25 = vrot.slane %v100_v24, %v108_v15 }
 0x155   :  { %v119_v29 = vsel %vm118_vm1, %v113_v25, %v109_v26 }
 0x156   :  { %v103_v27 = vpop.permute.xlu1 %102 }
 0x157   :  { %v117_v28 = vrot.slane %v103_v27, %v108_v15 }
 0x159   :  { %v121_v30 = vsel %vm120_vm2, %v117_v28, %v119_v29 }
 0x15a   :  { %124 = vst.msk [vmem:[#allocation8] sm:$0x7] %vm123_vm3, %v121_v30 }
 0x15b   :  { %226 = shalt.err (!%p223_p0)
}
 0x15c   :  { %s227_s24 = scalar_lea.hbm %s319_s3, 64 }
 0x15d   :  { %p228_p1 = scmp.ne.s32.totalorder %s319_s3, %s227_s24  ;;  %p231_p2 = scmp.lt.u32.totalorder %s227_s24, %s319_s3 }
 0x15f   :  { %p233_p3 = pnand %p231_p2, %p228_p1 }
 0x161   :  { %236 = shalt.err (!%p233_p3)
}
 0x162   :  { %134 = dma.vmem_to_hbm [thread:$0]  %s132_s20, 64, %s319_s3, [#allocation4]  }
 0x163   :  { %241 = dma.done.wait [#allocation4], 64  }
 0x164   :  { %242 = vsyncadd [#allocation4], 4294967232 }
 0x165   :  { %138 = vsyncpa [#allocation3], 1 }
 0x166   :  { %139 = vsyncpa [#allocation6], 1 }
 0x167   :  { %140 = vsyncpa [#allocation4], 1 }

</bundles_post_ra>
